<compile_context>
chip_gen: v7x
topology: tpu7x:2x2x1
jax: 0.10.0
libtpu: 0.0.40
codegen_flags: <defaults>
</compile_context>

<pallas_src>
import jax
import jax.numpy as jnp
from jax.experimental import pallas as pl
from jax.experimental.pallas import tpu as pltpu

NUM_HEADS = 4      # traj, traj_kl, obj, obj_kl
HEAD_PAD = 8       # sublane/lane-friendly padded head count


def _per_sample_loss_kernel(feat_ref, bbox_ref, mask_ref, wf_ref, wb_ref, ps_ref):
    """One (batch b, seq-tile s) grid step of the synthetic `net` loss heads."""
    s = pl.program_id(1)

    # New batch element -> reset the resident per-sample accumulator block.
    @pl.when(s == 0)
    def _():
        ps_ref[...] = jnp.zeros_like(ps_ref)

    x = feat_ref[0]                            # (TS, D)     streamed
    bb = bbox_ref[0]                           # (TS, BBOX)  streamed
    m = mask_ref[0].astype(jnp.float32)        # (1, TS)     lane-dense mask

    # Fused "net" heads: two MXU matmuls into one f32 tile (no HBM concat).
    proj = jnp.dot(x, wf_ref[...], preferred_element_type=jnp.float32)
    proj = proj + jnp.dot(bb, wb_ref[...], preferred_element_type=jnp.float32)
    msq = proj * proj                          # (TS, HEAD_PAD) f32

    # Mask-weighted per-sample reduction as a (1,TS) @ (TS,H) MXU dot: keeps the
    # mask lane-dense and avoids a per-step XLU sublane reduce.
    ps_ref[0] += jnp.dot(m, msq, preferred_element_type=jnp.float32)


def _pick_seq_tile(S, bytes_per_row, target_bytes=2 << 20):
    """Largest divisor of S (multiple of 128, or == S) whose tile fits the byte target."""
    fallback = S
    for ts in range(S, 0, -1):
        if S % ts:
            continue
        if ts != S and ts % 128:
            continue
        if ts * bytes_per_row <= target_bytes:
            return ts
        fallback = ts   # smallest layout-legal divisor seen so far
    # TODO(synk): for awkward S (e.g. large primes) add a padded/masked-tail
    # tiling path instead of falling back to a whole-sequence tile.
    return fallback


def net_per_sample_losses(feat, bbox_feat, valid_mask, w_feat, w_bbox):
    """Pallas stand-in for `net(...)`: per-sample (traj, traj_kl, obj, obj_kl) losses."""
    B, S, D = feat.shape
    BBOX = bbox_feat.shape[-1]
    assert w_feat.shape == (D, HEAD_PAD) and w_bbox.shape == (BBOX, HEAD_PAD)

    # Mask stays lane-dense: (B, 1, S) so each streamed tile is (1, 1, TS);
    # no 128x lane padding of a minor-dim-1 layout. (Tiny array, ~free.)
    mask = valid_mask.reshape(B, 1, S).astype(jnp.float32)

    f_isz = jnp.dtype(feat.dtype).itemsize
    b_isz = jnp.dtype(bbox_feat.dtype).itemsize
    w_isz = jnp.dtype(w_feat.dtype).itemsize
    bytes_per_row = D * f_isz + BBOX * b_isz + 4          # + f32 mask lane
    TS = _pick_seq_tile(S, bytes_per_row)
    ns = S // TS

    # VMEM request from actual double-buffered tile bytes (+margin); capped well
    # under v7x's 64 MiB physical VMEM / 32 MiB scoped default.
    tile_bytes = TS * bytes_per_row
    const_bytes = (D + BBOX) * HEAD_PAD * w_isz
    need = 2 * (2 * tile_bytes) + const_bytes + (2 << 20)
    vmem_limit = int(min(max(need, 8 << 20), 32 << 20))

    flops = 2 * B * S * (D + BBOX + 1) * HEAD_PAD
    bytes_accessed = (B * S * (D * f_isz + BBOX * b_isz + 4)
                      + const_bytes + B * HEAD_PAD * 4)

    grid_spec = pltpu.PrefetchScalarGridSpec(
        num_scalar_prefetch=0,
        grid=(B, ns),
        in_specs=[
            pl.BlockSpec((1, TS, D), lambda b, s: (b, s, 0)),      # feat stream
            pl.BlockSpec((1, TS, BBOX), lambda b, s: (b, s, 0)),   # bbox stream
            pl.BlockSpec((1, 1, TS), lambda b, s: (b, 0, s)),      # lane-dense mask
            pl.BlockSpec((D, HEAD_PAD), lambda b, s: (0, 0)),      # resident weights
            pl.BlockSpec((BBOX, HEAD_PAD), lambda b, s: (0, 0)),
        ],
        # One (1, 1, HEAD_PAD) accumulator block per batch element: resident
        # across the (arbitrary) seq axis, distinct per (parallel) batch index.
        out_specs=pl.BlockSpec((1, 1, HEAD_PAD), lambda b, s: (b, 0, 0)),
    )

    per_sample = pl.pallas_call(
        _per_sample_loss_kernel,
        out_shape=jax.ShapeDtypeStruct((B, 1, HEAD_PAD), jnp.float32),
        grid_spec=grid_spec,
        compiler_params=pltpu.CompilerParams(
            dimension_semantics=("parallel", "arbitrary"),
            vmem_limit_bytes=vmem_limit),
        cost_estimate=pl.CostEstimate(
            flops=int(flops), transcendentals=0,
            bytes_accessed=int(bytes_accessed)),
        # NOTE: pipeline_mode=pl.Buffered(3) on the feature stream is an option
        # on v5e/v6e (128 MiB VMEM) if per-step DMAs remain latency-exposed.
    )(feat, bbox_feat, mask, w_feat, w_bbox)

    return per_sample[:, 0, :NUM_HEADS]                    # (B, 4)


def model_forward_train(feat, bbox_feat, valid_mask, w_feat, w_bbox,
                        lambda_traj=None, lambda_traj_kl=None,
                        lambda_obj=None, lambda_obj_kl=None):
    """Training-mode `Model.forward`: (total_loss, losses dict)."""
    per_sample = net_per_sample_losses(feat, bbox_feat, valid_mask, w_feat, w_bbox)
    head_sums = per_sample.sum(axis=0)                     # loss_i.sum(), (4,)

    names = ("traj_loss", "traj_kl_loss", "obj_loss", "obj_kl_loss")
    lams = (lambda_traj, lambda_traj_kl, lambda_obj, lambda_obj_kl)
    total_loss = jnp.float32(0.0)
    losses = {}
    for i, (name, lam) in enumerate(zip(names, lams)):
        if lam is not None:
            term = jnp.float32(lam) * head_sums[i]
            total_loss = total_loss + term
            losses[name] = term
        else:
            losses[name] = 0.0
    losses["total_loss"] = total_loss
    return total_loss, losses, per_sample


def _reference(feat, bbox_feat, valid_mask, w_feat, w_bbox, lams):
    proj = (jnp.einsum("bsd,dh->bsh", feat, w_feat, preferred_element_type=jnp.float32)
            + jnp.einsum("bsd,dh->bsh", bbox_feat, w_bbox,
                         preferred_element_type=jnp.float32))
    msq = valid_mask[..., None].astype(jnp.float32) * proj * proj
    per_sample = msq.sum(axis=1)[:, :NUM_HEADS]
    scaled = jnp.asarray(lams, jnp.float32) * per_sample.sum(axis=0)
    return scaled.sum(), scaled, per_sample


if __name__ == "__main__":
    key = jax.random.PRNGKey(0)
    k_feat, k_bbox, k_mask, k_w, k_wb = jax.random.split(key, 5)

    B, S, D, BBOX = 2, 8, 32, 4
    # Inputs are created directly in their streamed dtype -> no wrapper-side
    # cast/materialization before the kernel.
    feat = jax.random.normal(k_feat, (B, S, D), jnp.bfloat16)
    bbox_feat = jax.random.normal(k_bbox, (B, S, BBOX), jnp.bfloat16)
    valid_mask = (jax.random.uniform(k_mask, (B, S)) > 0.3).astype(jnp.float32)

    # Synthetic-net parameters: head-padded once at setup.
    w_feat = jnp.zeros((D, HEAD_PAD), jnp.float32).at[:, :NUM_HEADS].set(
        0.1 * jax.random.normal(k_w, (D, NUM_HEADS), jnp.float32)).astype(jnp.bfloat16)
    w_bbox = jnp.zeros((BBOX, HEAD_PAD), jnp.float32).at[:, :NUM_HEADS].set(
        0.1 * jax.random.normal(k_wb, (BBOX, NUM_HEADS), jnp.float32)).astype(jnp.bfloat16)

    lambdas = (1.0, 0.1, 0.5, 0.05)   # traj, traj_kl, obj, obj_kl

    total_loss, losses, per_sample = model_forward_train(
        feat, bbox_feat, valid_mask, w_feat, w_bbox,
        lambda_traj=lambdas[0], lambda_traj_kl=lambdas[1],
        lambda_obj=lambdas[2], lambda_obj_kl=lambdas[3])
    jax.block_until_ready(total_loss)

    ref_total, ref_scaled, ref_ps = _reference(
        feat, bbox_feat, valid_mask, w_feat, w_bbox, lambdas)

    assert jnp.allclose(total_loss, ref_total, rtol=1e-2, atol=1e-3), (total_loss, ref_total)
    assert jnp.allclose(per_sample, ref_ps, rtol=1e-2, atol=1e-3)
    got_scaled = jnp.stack([losses["traj_loss"], losses["traj_kl_loss"],
                            losses["obj_loss"], losses["obj_kl_loss"]])
    assert jnp.allclose(got_scaled, ref_scaled, rtol=1e-2, atol=1e-3)

    print("KERNEL_OK")
</pallas_src>

<mosaic_0001>
module attributes {stable_mosaic.version = 11 : i64} {
  func.func @_per_sample_loss_kernel(%arg0: i32, %arg1: i32, %arg2: memref<1x8x32xbf16, #tpu.memory_space<vmem>>, %arg3: memref<1x8x4xbf16, #tpu.memory_space<vmem>>, %arg4: memref<1x1x8xf32, #tpu.memory_space<vmem>>, %arg5: memref<32x8xbf16, #tpu.memory_space<vmem>>, %arg6: memref<4x8xbf16, #tpu.memory_space<vmem>>, %arg7: memref<1x1x8xf32, #tpu.memory_space<vmem>>) attributes {dimension_semantics = [#tpu.dimension_semantics<parallel>, #tpu.dimension_semantics<arbitrary>], iteration_bounds = array<i64: 2, 1>, scalar_prefetch = 0 : i64, scratch_operands = 0 : i64, tpu.core_type = #tpu.core_type<tc>, window_params = [{transform_indices = @transform_0, window_bounds = array<i64: 1, 8, 32>}, {transform_indices = @transform_1, window_bounds = array<i64: 1, 8, 4>}, {transform_indices = @transform_2, window_bounds = array<i64: 1, 1, 8>}, {pipeline_mode = #tpu.pipeline_mode<synchronous>, transform_indices = @transform_3, window_bounds = array<i64: 32, 8>}, {pipeline_mode = #tpu.pipeline_mode<synchronous>, transform_indices = @transform_4, window_bounds = array<i64: 4, 8>}, {transform_indices = @transform_5, window_bounds = array<i64: 1, 1, 8>}]} {
    %c0_i32 = arith.constant 0 : i32
    %0 = arith.cmpi eq, %arg1, %c0_i32 : i32
    %1 = arith.extui %0 : i1 to i32
    %c0_i32_0 = arith.constant 0 : i32
    %2 = arith.cmpi ne, %1, %c0_i32_0 : i32
    scf.if %2 {
      %cst_21 = arith.constant 0.000000e+00 : f32
      %22 = vector.broadcast %cst_21 : f32 to vector<1x1x8xf32>
      %c0_22 = arith.constant 0 : index
      %c0_23 = arith.constant 0 : index
      %c0_24 = arith.constant 0 : index
      %23 = vector.load %arg7[%c0_22, %c0_23, %c0_24] : memref<1x1x8xf32, #tpu.memory_space<vmem>>, vector<1x1x8xf32>
      tpu.vector_store %arg7[%c0_22, %c0_23, %c0_24], %22 {strides = array<i32>} : memref<1x1x8xf32, #tpu.memory_space<vmem>>, vector<1x1x8xf32>,
    } else {
    }
    %c0 = arith.constant 0 : index
    %c0_1 = arith.constant 0 : index
    %c0_2 = arith.constant 0 : index
    %3 = vector.load %arg2[%c0, %c0_1, %c0_2] : memref<1x8x32xbf16, #tpu.memory_space<vmem>>, vector<1x8x32xbf16>
    %4 = vector.shape_cast %3 : vector<1x8x32xbf16> to vector<8x32xbf16>
    %c0_3 = arith.constant 0 : index
    %c0_4 = arith.constant 0 : index
    %c0_5 = arith.constant 0 : index
    %5 = vector.load %arg3[%c0_3, %c0_4, %c0_5] : memref<1x8x4xbf16, #tpu.memory_space<vmem>>, vector<1x8x4xbf16>
    %6 = vector.shape_cast %5 : vector<1x8x4xbf16> to vector<8x4xbf16>
    %c0_6 = arith.constant 0 : index
    %c0_7 = arith.constant 0 : index
    %c0_8 = arith.constant 0 : index
    %7 = vector.load %arg4[%c0_6, %c0_7, %c0_8] : memref<1x1x8xf32, #tpu.memory_space<vmem>>, vector<1x1x8xf32>
    %8 = vector.shape_cast %7 : vector<1x1x8xf32> to vector<1x8xf32>
    %c0_9 = arith.constant 0 : index
    %c0_10 = arith.constant 0 : index
    %9 = vector.load %arg5[%c0_9, %c0_10] : memref<32x8xbf16, #tpu.memory_space<vmem>>, vector<32x8xbf16>
    %cst = arith.constant dense<0.000000e+00> : vector<8x8xf32>
    %10 = tpu.matmul %4, %9, %cst {dimension_numbers = #tpu.dot_dimension_numbers<[1], [0], [0], [1], [0, 0, 1, 1], [], []>} : vector<8x32xbf16>, vector<32x8xbf16>, vector<8x8xf32> -> vector<8x8xf32>
    %c0_11 = arith.constant 0 : index
    %c0_12 = arith.constant 0 : index
    %11 = vector.load %arg6[%c0_11, %c0_12] : memref<4x8xbf16, #tpu.memory_space<vmem>>, vector<4x8xbf16>
    %cst_13 = arith.constant dense<0.000000e+00> : vector<8x8xf32>
    %12 = tpu.matmul %6, %11, %cst_13 {dimension_numbers = #tpu.dot_dimension_numbers<[1], [0], [0], [1], [0, 0, 1, 1], [], []>} : vector<8x4xbf16>, vector<4x8xbf16>, vector<8x8xf32> -> vector<8x8xf32>
    %13 = arith.addf %10, %12 : vector<8x8xf32>
    %14 = arith.mulf %13, %13 : vector<8x8xf32>
    %c0_14 = arith.constant 0 : index
    %c0_15 = arith.constant 0 : index
    %c0_16 = arith.constant 0 : index
    %15 = vector.load %arg7[%c0_14, %c0_15, %c0_16] : memref<1x1x8xf32, #tpu.memory_space<vmem>>, vector<1x1x8xf32>
    %16 = vector.shape_cast %15 : vector<1x1x8xf32> to vector<1x8xf32>
    %cst_17 = arith.constant dense<0.000000e+00> : vector<1x8xf32>
    %17 = tpu.matmul %8, %14, %cst_17 {dimension_numbers = #tpu.dot_dimension_numbers<[1], [0], [0], [1], [0, 0, 1, 1], [], []>} : vector<1x8xf32>, vector<8x8xf32>, vector<1x8xf32> -> vector<1x8xf32>
    %18 = arith.addf %16, %17 : vector<1x8xf32>
    %c0_18 = arith.constant 0 : index
    %c0_19 = arith.constant 0 : index
    %c0_20 = arith.constant 0 : index
    %19 = vector.load %arg7[%c0_18, %c0_19, %c0_20] : memref<1x1x8xf32, #tpu.memory_space<vmem>>, vector<1x1x8xf32>
    %20 = vector.shape_cast %19 : vector<1x1x8xf32> to vector<1x8xf32>
    %21 = vector.shape_cast %18 : vector<1x8xf32> to vector<1x1x8xf32>
    tpu.vector_store %arg7[%c0_18, %c0_19, %c0_20], %21 {strides = array<i32>} : memref<1x1x8xf32, #tpu.memory_space<vmem>>, vector<1x1x8xf32>,
    return
  }
  func.func @transform_0(%arg0: i32, %arg1: i32) -> (i32, i32, i32) {
    %c0_i32 = arith.constant 0 : i32
    %c0_i32_0 = arith.constant 0 : i32
    return %arg0, %arg1, %c0_i32 : i32, i32, i32
  }
  func.func @transform_1(%arg0: i32, %arg1: i32) -> (i32, i32, i32) {
    %c0_i32 = arith.constant 0 : i32
    %c0_i32_0 = arith.constant 0 : i32
    return %arg0, %arg1, %c0_i32 : i32, i32, i32
  }
  func.func @transform_2(%arg0: i32, %arg1: i32) -> (i32, i32, i32) {
    %c0_i32 = arith.constant 0 : i32
    %c0_i32_0 = arith.constant 0 : i32
    return %arg0, %c0_i32, %arg1 : i32, i32, i32
  }
  func.func @transform_3(%arg0: i32, %arg1: i32) -> (i32, i32) {
    %c0_i32 = arith.constant 0 : i32
    %c0_i32_0 = arith.constant 0 : i32
    %c0_i32_1 = arith.constant 0 : i32
    return %c0_i32, %c0_i32_0 : i32, i32
  }
  func.func @transform_4(%arg0: i32, %arg1: i32) -> (i32, i32) {
    %c0_i32 = arith.constant 0 : i32
    %c0_i32_0 = arith.constant 0 : i32
    %c0_i32_1 = arith.constant 0 : i32
    return %c0_i32, %c0_i32_0 : i32, i32
  }
  func.func @transform_5(%arg0: i32, %arg1: i32) -> (i32, i32, i32) {
    %c0_i32 = arith.constant 0 : i32
    %c0_i32_0 = arith.constant 0 : i32
    %c0_i32_1 = arith.constant 0 : i32
    return %arg0, %c0_i32, %c0_i32_0 : i32, i32, i32
  }
}

</mosaic_0001>

<bundles_post_ra>
// kernel: tpu_custom_call.1
= control target key start
LH: loop header
LB: loop body
LE: loop exit
PB: predicated region body
PF: predicated region fallthrough
CT: control target
= control target key end

     0   :  { %10 = vsyncpa [#allocation3], 0  ;;  %s949_s0 = inlined_call_operand.vmem [shape: bf16[2,8,32], index: 0, kind: input, shape index: {}]   ;;  %s950_s1 = inlined_call_operand.vmem [shape: bf16[2,8,4], index: 1, kind: input, shape index: {}]   ;;  %s951_s2 = inlined_call_operand.vmem [shape: f32[2,1,8], index: 2, kind: input, shape index: {}]   ;;  %s952_s3 = inlined_call_operand.vmem [shape: bf16[32,8], index: 3, kind: input, shape index: {}]   ;;  %s953_s4 = inlined_call_operand.vmem [shape: bf16[4,8], index: 4, kind: input, shape index: {}]   ;;  %s954_s5 = inlined_call_operand.hbm [shape: f32[2,1,8], index: 5, kind: output, shape index: {}]  }
   0x1   :  { %12 = vsyncpa [#allocation3 + $0x1], 0  ;;  %s813_s18 = smov 0   ;;  %s815_s19 = smov 0  }
   0x2   :  { %s817_s20 = smov 0   ;;  %s819_s21 = smov 0  }
   0x3   :  { %s821_s22 = smov 0   ;;  %s823_s23 = smov 0  }
   0x4 LB: > { %s599_s24 = sadd.s32 4294967295, %s778_s23   ;;  %s600_s25 = sadd.s32 4294967294, %s778_s23   ;;  %s778_s23 = sphi %s823_s23, %s18_s23   ;;  %s774_s22 = sphi %s821_s22, %s961_s22   ;;  %s770_s21 = sphi %s819_s21, %s960_s21   ;;  %s766_s20 = sphi %s817_s20, %s959_s20   ;;  %s762_s19 = sphi %s815_s19, %s958_s19   ;;  %s758_s18 = sphi %s813_s18, %s957_s18  }
   0x5   : > { %s30_s26 = sadd.s32 1, %s774_s22  ;;  %s163_s27 = sadd.s32 1, %s766_s20 }
   0x6   : > { %p32_p0 = scmp.ge.s32.totalorder %s30_s26, 2  ;;  %p173_p1 = scmp.ne.s32.totalorder %s766_s20, %s762_s19 }
   0x7   : > { %p174_p2 = scmp.eq.s32.totalorder %s599_s24, 1  ;;  %p179_p3 = scmp.ne.s32.totalorder %s762_s19, %s758_s18 }
   0x8   : > { %s963_s26 = smov (%p32_p0, %s30_s26), 0  ;;  %p180_p5 = scmp.eq.s32.totalorder %s600_s25, 1 }
   0x9   : > { %p853_p4 = por %p174_p2, %p173_p1  ;;  %s160_s29 = ssub.s32 %s774_s22, %s963_s26 }
   0xa   : > { %p603_p6 = scmp.ge.s32.totalorder %s778_s23, 1  ;;  %p161_p7 = scmp.eq.s32.totalorder %s160_s29, 0 }
   0xb   : > { %p860_p8 = por %p180_p5, %p179_p3  ;;  %p233_p9 = scmp.lt.s32.totalorder %s778_s23, 3 }
   0xc   : > { %s866_s6 = scalar_select %p161_p7, %s766_s20, %s163_s27  }
   0xd   : > { %p234_p10 = pnand %p603_p6, %p233_p9 }
   0xe   : > { %v698_v0 = vld [vmem:[%s952_s3] sm:$0xff] (!%p234_p10)   ;;  %v780_v1 = vmov (!%p234_p10), 0.0   ;;  %vm314_vm0 = vcmask (!%p234_p10), 1041408   ;;  %p275_p11 = scmp.lt.s32.totalorder (!%p234_p10), %s770_s21, 1  ;;  %vm781_vm1 = vmmov (!%p234_p10), 0   ;;  %v699_v4 = vld [vmem:[%s952_s3 + $0x8] sm:$0xff] (!%p234_p10)  }
   0xf   : > { %237 = sbr.rel (%p234_p10) target bundleno = 473 (0x1d9), region = 40  ;;  %627 = vmatprep.subr.bf16.mxu0 (!%p234_p10), %v780_v1  ;;  %621 = vmatprep.subr.bf16.mxu1 (!%p234_p10), %v780_v1  ;;  %v309_v2 = vld [vmem:[%s953_s4] sm:$0x3] (!%p234_p10)  ;;  %vm310_vm2 = vcmask (!%p234_p10), 31744   ;;  %vm370_vm3 = vcmask (!%p234_p10), 261120   ;;  %s273_s29 = sand.u32 (!%p234_p10), 1, %s762_s19  }
  0x10   : > { %628 = vmatpush3.bf16.msra.mxu0 (!%p234_p10), %v698_v0  ;;  %v316_v3 = vsel (!%p234_p10), %vm314_vm0, %v309_v2, 0  ;;  %623 = vmatprep.mubr.msk.bf16.mxu1 (!%p234_p10), %vm781_vm1, %v780_v1  ;;  %vm300_vm4 = vcmask (!%p234_p10), 57344   ;;  %s274_s7 = scalar_lea.vmem (!%p234_p10), [#allocation2], %s273_s29  ;;  %vm416_vm5 = vcmask (!%p234_p10), 64512   ;;  %s611_s11 = sshll.u32 (!%p234_p10), %s770_s21, 4 }
  0x11   : > { %622 = vmatpush3.bf16.msra.mxu1 (!%p234_p10), %v316_v3  ;;  %629 = vmatprep.subr.bf16.mxu0 (!%p234_p10), %v780_v1  ;;  %301 = vst.msk [vmem:[%s274_s7] sm:$0x1] (!%p234_p10), %vm300_vm4, %v780_v1  ;;  %s506_s12 = sshll.u32 (!%p234_p10), %s274_s7, 4  ;;  %s901_s15 = scalar_lea.hbm (!%p234_p10), %s954_s5, %s611_s11  ;;  %s903_s12 = int_to_ptr.vmem [resolvable:$true] %s506_s12 }
  0x12   : > { %631 = vmatprep.mubr.msk.bf16.mxu0 (!%p234_p10), %vm781_vm1, %v780_v1  ;;  %635 = vmatprep.subr.mxu1 (!%p234_p10), %v780_v1  ;;  %s494_s16 = scalar_lea.sflag (!%p234_p10), [#allocation3], %s273_s29 }
  0x14   : > { %630 = vmatpush3.bf16.msra.mxu0 (!%p234_p10), %v699_v4 }
  0x16   : > { %s880_s13 = scalar_select %p275_p11, %s770_s21, 1 }
  0x17   : > { %s782_s21 = smov [#allocation2]  }
  0x18   : > { %s604_s14 = sshll.u32 %s880_s13, 2  ;;  %s294_s10 = scalar_lea.vmem %s951_s2, %s880_s13  ;;  %v415_v18 = vld [vmem:[%s274_s7] sm:$0x1] }
  0x19   : > { %s288_s17 = scalar_lea.vmem %s950_s1, %s604_s14  ;;  %s281_s27 = scalar_lea.vmem %s949_s0, %s604_s14  ;;  %v304_v17 = vld [vmem:[%s294_s10] sm:$0x1] }
  0x1a   : > { %v303_v5 = vld [vmem:[%s288_s17] sm:$0xf]  ;;  %s700_s17 = scalar_lea.vmem %s903_s12, 16  ;;  %s704_s24 = sshll.u32 %s782_s21, 4  ;;  %s705_s24 = int_to_ptr.vmem [resolvable:$false] %s704_s24 }
  0x1b   : > { %v302_v6 = vld [vmem:[%s281_s27] sm:$0xf]  ;;  %624 = vmatmul.mubr.msk.bf16.vlgmr.msra.gmra.mrb[0].mxu1 %vm310_vm2, %v303_v5  ;;  %p701_p12 = scmp.ne.s32.totalorder %s903_s12, %s700_s17  ;;  %s706_s25 = scalar_lea.vmem %s705_s24, 32 }
  0x1c   : > { %632 = vmatmul.mubr.msk.bf16.vlgmr.msra.gmra.mrb[0].mxu0 %vm370_vm3, %v302_v6  ;;  %637 = vmatprep.mubr.msk.f32.mxu1 %vm781_vm1, %v780_v1  ;;  %p707_p1 = scmp.lt.s32.totalorder %s903_s12, %s705_s24  ;;  %p708_p2 = scmp.lt.s32.totalorder %s706_s25, %s700_s17 }
  0x1d   : > { %p702_p13 = pnand %p701_p12, %p853_p4 }
  0x1e   : > { %p709_p3 = por %p708_p2, %p707_p1 }
  0x1f   : > { %p703_p0 = pneg %p702_p13 }
  0x21   : > { %p710_p5 = pnand %p709_p3, %p703_p0 }
  0xee   : > { %v352_v7 = vpop.f32.mrb[0].mxu1 }
  0xef   : > { %v625_v8 = vpop.f32.mrb[1].mxu1  ;;  %v408_v9 = vpop.f32.mrb[0].mxu0 }
  0xf0   : > { %v355_v10 = vpop.f32.mrb[2].mxu1  ;;  %v409_v11 = vadd.f32 %v408_v9, %v352_v7  ;;  %v633_v12 = vpop.f32.mrb[1].mxu0 }
  0xf1   : > { %v626_v13 = vpop.f32.mrb[3].mxu1  ;;  %v411_v14 = vpop.f32.mrb[2].mxu0 }
  0xf2   : > { %v414_v15 = vmul.f32 %v409_v11, %v409_v11  ;;  %v634_v16 = vpop.f32.mrb[3].mxu0 }
  0xf4   : > { %636 = vmatpush3.msra.mxu1 %v414_v15 }
  0xf5   : > { %638 = vmatmul.mubr.msk.f32.vlgmr.msra.gmra.mrb[4].mxu1 %vm416_vm5, %v304_v17 }
 0x1c8   : > { %v486_v19 = vpop.f32.mrb[4].mxu1 }
 0x1c9   : > { %v490_v20 = vadd.f32 %v486_v19, %v415_v18  ;;  %v639_v21 = vpop.f32.mrb[5].mxu1 }
 0x1cb   : > { %492 = vst.msk [vmem:[%s274_s7] sm:$0x1] %vm300_vm4, %v490_v20 }
 0x1cc   : > { %713 = shalt.err (!%p710_p5)
}
 0x1cd   : > { %s714_s27 = scalar_lea.hbm %s901_s15, 16  ;;  %s718_s8 = scalar_lea.hbm %s954_s5, 32 }
 0x1ce   : > { %p715_p6 = scmp.ne.s32.totalorder %s901_s15, %s714_s27  ;;  %p719_p10 = scmp.lt.u32.totalorder %s901_s15, %s954_s5 }
 0x1cf   : > { %p720_p11 = scmp.lt.u32.totalorder %s718_s8, %s714_s27  ;;  %p722_p13 = scmp.lt.u32.totalorder %s714_s27, %s901_s15 }
 0x1d0   : > { %p716_p7 = pnand %p715_p6, %p853_p4 }
 0x1d1   : > { %p721_p12 = por %p720_p11, %p719_p10 }
 0x1d2   : > { %p717_p9 = pneg %p716_p7 }
 0x1d3   : > { %p723_p0 = por %p722_p13, %p721_p12 }
 0x1d5   : > { %p724_p1 = pnand %p723_p0, %p717_p9 }
 0x1d7   : > { %727 = shalt.err (!%p724_p1)
}
 0x1d8   : > { %641 = dma.vmem_to_hbm [thread:$0]  (%p853_p4), %s903_s12, 16, %s901_s15, %s494_s16  }
 0x1d9 PF: > { %p647_p2 = scmp.ge.s32.totalorder %s778_s23, 2  ;;  %s518_s11 = sand.u32 1, %s758_s18  }
 0x1da   : > { %s519_s14 = scalar_lea.sflag [#allocation3], %s518_s11 }
 0x1db   : > { %p644_p3 = pnand %p647_p2, %p860_p8 }
 0x1dd   : > { %753 = dma.done.wait (!%p644_p3), %s519_s14, 16  }
 0x1de   : > { %755 = vsyncadd (!%p644_p3), %s519_s14, 4294967280  ;;  %s18_s23 = sadd.s32 1, %s778_s23   ;;  %s957_s18 = smov %s762_s19 }
 0x1df   : > { %p15_p5 = scmp.ge.s32.totalorder %s18_s23, 4   ;;  %s958_s19 = smov %s766_s20 }
 0x1e0   : > { %s959_s20 = smov %s866_s6  ;;  %s960_s21 = smov %s774_s22 }
 0x1e1   : > { %s961_s22 = smov %s963_s26  ;;  %17 = sbr.rel (!%p15_p5) target bundleno = 4 (0x4), region = 85 }
 0x1e8   :  { %523 = vsyncpa [#allocation3], 1 }
 0x1e9   :  { %525 = vsyncpa [#allocation3 + $0x1], 1 }

</bundles_post_ra>
